<compile_context>
chip_gen: v7x
topology: tpu7x:2x2x1
jax: 0.10.0
libtpu: 0.0.40
codegen_flags: <defaults>
</compile_context>

<pallas_src>
import functools

import jax
import jax.numpy as jnp
from jax.experimental import pallas as pl
from jax.experimental.pallas import tpu as pltpu

NEG_INF = -1e20  # neginf(float32) in the reference implementation


def _poly_attn_kernel(x_ref, y_ref, m_ref, o_ref, *, use_bf16):
    # x_ref: (Bb, Nq, D), y_ref: (Bb, Nk, D), m_ref: (Bb, 1, Nk), o_ref: (Bb, Nq, D)
    x = x_ref[...]
    y = y_ref[...]
    m = m_ref[...]

    if use_bf16:
        xq = x.astype(jnp.bfloat16)
        yk = y.astype(jnp.bfloat16)
    else:
        xq, yk = x, y

    # l1 = bmm(xs, ys^T)  (attn == 'basic', no sqrt(d_k) scaling).
    # Batched dot_general contracting the last dims: no materialized transpose.
    scores = jnp.einsum("bqd,bkd->bqk", xq, yk,
                        preferred_element_type=jnp.float32)          # (Bb, Nq, Nk) fp32

    # masked_fill_(mask_ys == 0, neginf); m broadcasts (Bb,1,Nk) -> (Bb,Nq,Nk)
    scores = jnp.where(m == 0, jnp.float32(NEG_INF), scores)

    # l2 = softmax(l1, dim=2, dtype=float32)  (numerically stable)
    mx = jnp.max(scores, axis=-1, keepdims=True)
    e = jnp.exp(scores - mx)
    denom = jnp.sum(e, axis=-1, keepdims=True)
    probs = e * pl.reciprocal(denom, approx=True)                    # (Bb, Nq, Nk) fp32

    # lhs_emb = bmm(l2, values)   (values defaults to ys)
    pv = probs.astype(jnp.bfloat16) if use_bf16 else probs.astype(yk.dtype)
    out = jnp.einsum("bqk,bkd->bqd", pv, yk,
                     preferred_element_type=jnp.float32)             # (Bb, Nq, D) fp32
    o_ref[...] = out.astype(o_ref.dtype)


def _choose_batch_block(B, Nq, Nk, D, itemsize, vmem_budget_bytes=8 << 20):
    """Pick how many batch elements to fuse per grid step."""
    # Double-buffered inputs/outputs + fp32 score intermediates, per batch elem.
    per_b = (2 * ((Nq * D + Nk * D + Nq * D) * itemsize + Nk * 4)
             + 3 * Nq * Nk * 4)
    bb = max(1, min(B, vmem_budget_bytes // max(per_b, 1)))
    if B >= 2:
        # Keep at least 2 grid steps so the "parallel" axis can shard across
        # the two TensorCores on v7x (no effect on v5e/v6e).
        bb = min(bb, B // 2)
    bb = max(1, bb)
    while B % bb:   # ensure bb divides B exactly
        bb -= 1
    return bb


def poly_basic_attention(xs, ys, mask_ys=None, *, poly_type="codes", n_codes=None,
                         use_bf16_matmul=False, batch_block=None):
    """JAX wrapper reproducing PolyBasicAttention.forward
    (dim=2, attn='basic', residual=False, get_weights=False, values=ys)."""
    # TODO(synk): attn='cosine'/'sqrt', residual=True, get_weights=True and a
    # distinct `values` tensor are not implemented (polyencoder uses this config).
    B, Nq, D = xs.shape
    _, Nk, _ = ys.shape
    if n_codes is None:
        n_codes = Nq
    if mask_ys is None:
        mask_ys = jnp.ones((B, Nk), dtype=jnp.int32)
    mask3 = mask_ys.reshape(B, 1, Nk).astype(jnp.int32)

    Bb = batch_block or _choose_batch_block(B, Nq, Nk, D, xs.dtype.itemsize)
    grid = (B // Bb,)

    kernel = functools.partial(_poly_attn_kernel, use_bf16=use_bf16_matmul)

    out = pl.pallas_call(
        kernel,
        out_shape=jax.ShapeDtypeStruct((B, Nq, D), xs.dtype),
        grid_spec=pltpu.PrefetchScalarGridSpec(
            num_scalar_prefetch=0,
            grid=grid,
            in_specs=[
                pl.BlockSpec((Bb, Nq, D), lambda b: (b, 0, 0)),
                pl.BlockSpec((Bb, Nk, D), lambda b: (b, 0, 0)),
                pl.BlockSpec((Bb, 1, Nk), lambda b: (b, 0, 0)),
            ],
            out_specs=pl.BlockSpec((Bb, Nq, D), lambda b: (b, 0, 0)),
        ),
        compiler_params=pltpu.CompilerParams(
            dimension_semantics=("parallel",),
        ),
    )(xs, ys, mask3)

    # lhs_emb.squeeze(self.dim - 1)  -> squeeze axis 1 only if Nq == 1
    if Nq == 1:
        out = out.reshape(B, D)
    # PolyBasicAttention edge case: re-expand when poly_type=='codes', n_codes==1
    if poly_type == "codes" and n_codes == 1 and out.ndim == 2:
        out = out[:, None, :]
    return out


def _reference(xs, ys, mask_ys):
    scores = jnp.einsum("bqd,bkd->bqk", xs, ys)
    scores = jnp.where(mask_ys[:, None, :] == 0, NEG_INF, scores)
    probs = jax.nn.softmax(scores.astype(jnp.float32), axis=-1).astype(xs.dtype)
    return jnp.einsum("bqk,bkd->bqd", probs, ys)


if __name__ == "__main__":
    key = jax.random.PRNGKey(0)
    k1, k2 = jax.random.split(key, 2)

    B, Nq, Nk, D = 2, 8, 16, 32
    xs = jax.random.normal(k1, (B, Nq, D), dtype=jnp.float32)
    ys = jax.random.normal(k2, (B, Nk, D), dtype=jnp.float32)
    # mask: 1 = keep, 0 = masked-out key (mask out the last 3 keys of batch 1)
    mask = jnp.ones((B, Nk), dtype=jnp.int32)
    mask = mask.at[1, Nk - 3:].set(0)

    out = poly_basic_attention(xs, ys, mask, poly_type="codes", n_codes=Nq)
    out = jax.block_until_ready(out)

    ref = _reference(xs, ys, mask)
    assert out.shape == (B, Nq, D)
    # approx reciprocal (EUP vrcp) has ~2^-12 relative error -> tolerance 2e-3
    assert jnp.allclose(out, ref, atol=2e-3, rtol=2e-3)

    # n_codes == 1 edge case (accidental dimensionality reduction is undone)
    xs1 = xs[:, :1, :]
    out1 = jax.block_until_ready(
        poly_basic_attention(xs1, ys, mask, poly_type="codes", n_codes=1))
    ref1 = _reference(xs1, ys, mask)
    assert out1.shape == (B, 1, D)
    assert jnp.allclose(out1, ref1, atol=2e-3, rtol=2e-3)

    print("KERNEL_OK")
</pallas_src>

<mosaic_0001>
module attributes {stable_mosaic.version = 11 : i64} {
  func.func @_poly_attn_kernel(%arg0: i32, %arg1: memref<1x8x32xf32, #tpu.memory_space<vmem>>, %arg2: memref<1x16x32xf32, #tpu.memory_space<vmem>>, %arg3: memref<1x1x16xi32, #tpu.memory_space<vmem>>, %arg4: memref<1x8x32xf32, #tpu.memory_space<vmem>>) attributes {dimension_semantics = [#tpu.dimension_semantics<parallel>], iteration_bounds = array<i64: 2>, scalar_prefetch = 0 : i64, scratch_operands = 0 : i64, tpu.core_type = #tpu.core_type<tc>, window_params = [{transform_indices = @transform_0, window_bounds = array<i64: 1, 8, 32>}, {transform_indices = @transform_1, window_bounds = array<i64: 1, 16, 32>}, {transform_indices = @transform_2, window_bounds = array<i64: 1, 1, 16>}, {transform_indices = @transform_3, window_bounds = array<i64: 1, 8, 32>}]} {
    %c0 = arith.constant 0 : index
    %c0_0 = arith.constant 0 : index
    %c0_1 = arith.constant 0 : index
    %0 = vector.load %arg1[%c0, %c0_0, %c0_1] : memref<1x8x32xf32, #tpu.memory_space<vmem>>, vector<1x8x32xf32>
    %c0_2 = arith.constant 0 : index
    %c0_3 = arith.constant 0 : index
    %c0_4 = arith.constant 0 : index
    %1 = vector.load %arg2[%c0_2, %c0_3, %c0_4] : memref<1x16x32xf32, #tpu.memory_space<vmem>>, vector<1x16x32xf32>
    %c0_5 = arith.constant 0 : index
    %c0_6 = arith.constant 0 : index
    %c0_7 = arith.constant 0 : index
    %2 = vector.load %arg3[%c0_5, %c0_6, %c0_7] : memref<1x1x16xi32, #tpu.memory_space<vmem>>, vector<1x1x16xi32>
    "tpu.trace_start"() <{level = 10 : i32, message = "bqd,bkd->bqk"}> : () -> ()
    %cst = arith.constant dense<0.000000e+00> : vector<1x8x16xf32>
    %3 = tpu.matmul %0, %1, %cst {dimension_numbers = #tpu.dot_dimension_numbers<[2], [2], [1], [1], [0, 0, 0, 1, 1, 1], [0], [0]>} : vector<1x8x32xf32>, vector<1x16x32xf32>, vector<1x8x16xf32> -> vector<1x8x16xf32>
    %c0_i32 = arith.constant 0 : i32
    "tpu.trace_stop"() : () -> ()
    %4 = vector.broadcast %c0_i32 : i32 to vector<1x1x16xi32>
    %5 = arith.cmpi eq, %2, %4 : vector<1x1x16xi32>
    %cst_8 = arith.constant -1.000000e+20 : f32
    %6 = vector.shape_cast %5 : vector<1x1x16xi1> to vector<1x1x16xi1>
    %7 = vector.broadcast %6 : vector<1x1x16xi1> to vector<1x8x16xi1>
    %8 = vector.broadcast %cst_8 : f32 to vector<1x8x16xf32>
    %9 = arith.select %7, %8, %3 : vector<1x8x16xi1>, vector<1x8x16xf32>
    %cst_9 = arith.constant dense<0xFF800000> : vector<1x8xf32>
    %10 = vector.multi_reduction <maximumf>, %9, %cst_9 [2] : vector<1x8x16xf32> to vector<1x8xf32>
    %11 = vector.shape_cast %10 : vector<1x8xf32> to vector<1x8x1xf32>
    %12 = vector.broadcast %11 : vector<1x8x1xf32> to vector<1x8x16xf32>
    %13 = arith.subf %9, %12 : vector<1x8x16xf32>
    %14 = math.exp %13 : vector<1x8x16xf32>
    %cst_10 = arith.constant dense<0.000000e+00> : vector<1x8xf32>
    %15 = vector.multi_reduction <add>, %14, %cst_10 [2] : vector<1x8x16xf32> to vector<1x8xf32>
    %16 = vector.shape_cast %15 : vector<1x8xf32> to vector<1x8x1xf32>
    %17 = tpu.reciprocal %16 {approx = true} : vector<1x8x1xf32> -> vector<1x8x1xf32>
    %18 = vector.broadcast %17 : vector<1x8x1xf32> to vector<1x8x16xf32>
    %19 = arith.mulf %14, %18 : vector<1x8x16xf32>
    "tpu.trace_start"() <{level = 10 : i32, message = "bqk,bkd->bqd"}> : () -> ()
    %cst_11 = arith.constant dense<0.000000e+00> : vector<1x8x32xf32>
    %20 = tpu.matmul %19, %1, %cst_11 {dimension_numbers = #tpu.dot_dimension_numbers<[2], [1], [1], [2], [0, 0, 0, 1, 1, 2], [0], [0]>} : vector<1x8x16xf32>, vector<1x16x32xf32>, vector<1x8x32xf32> -> vector<1x8x32xf32>
    "tpu.trace_stop"() : () -> ()
    %c0_12 = arith.constant 0 : index
    %c0_13 = arith.constant 0 : index
    %c0_14 = arith.constant 0 : index
    %21 = vector.load %arg4[%c0_12, %c0_13, %c0_14] : memref<1x8x32xf32, #tpu.memory_space<vmem>>, vector<1x8x32xf32>
    tpu.vector_store %arg4[%c0_12, %c0_13, %c0_14], %20 {strides = array<i32>} : memref<1x8x32xf32, #tpu.memory_space<vmem>>, vector<1x8x32xf32>,
    return
  }
  func.func @transform_0(%arg0: i32) -> (i32, i32, i32) {
    %c0_i32 = arith.constant 0 : i32
    %c0_i32_0 = arith.constant 0 : i32
    %c0_i32_1 = arith.constant 0 : i32
    return %arg0, %c0_i32, %c0_i32_0 : i32, i32, i32
  }
  func.func @transform_1(%arg0: i32) -> (i32, i32, i32) {
    %c0_i32 = arith.constant 0 : i32
    %c0_i32_0 = arith.constant 0 : i32
    %c0_i32_1 = arith.constant 0 : i32
    return %arg0, %c0_i32, %c0_i32_0 : i32, i32, i32
  }
  func.func @transform_2(%arg0: i32) -> (i32, i32, i32) {
    %c0_i32 = arith.constant 0 : i32
    %c0_i32_0 = arith.constant 0 : i32
    %c0_i32_1 = arith.constant 0 : i32
    return %arg0, %c0_i32, %c0_i32_0 : i32, i32, i32
  }
  func.func @transform_3(%arg0: i32) -> (i32, i32, i32) {
    %c0_i32 = arith.constant 0 : i32
    %c0_i32_0 = arith.constant 0 : i32
    %c0_i32_1 = arith.constant 0 : i32
    return %arg0, %c0_i32, %c0_i32_0 : i32, i32, i32
  }
}

</mosaic_0001>

<bundles_post_ra>
// kernel: tpu_custom_call.1
= control target key start
LH: loop header
LB: loop body
LE: loop exit
PB: predicated region body
PF: predicated region fallthrough
CT: control target
= control target key end

     0   :  { %8 = vsyncpa [#allocation3], 0  ;;  %s1032_s0 = inlined_call_operand.hbm [shape: f32[2,8,32], index: 0, kind: input, shape index: {}]   ;;  %s1033_s1 = inlined_call_operand.hbm [shape: f32[2,16,32], index: 1, kind: input, shape index: {}]   ;;  %s1034_s2 = inlined_call_operand.vmem [shape: s32[2,1,16], index: 2, kind: input, shape index: {}]   ;;  %s1035_s3 = inlined_call_operand.hbm [shape: f32[2,8,32], index: 3, kind: output, shape index: {}]  }
   0x1   :  { %10 = vsyncpa [#allocation3 + $0x1], 0 }
   0x2   :  { %11 = vsyncpa [#allocation6], 0 }
   0x3   :  { %13 = vsyncpa [#allocation6 + $0x1], 0 }
   0x4   :  { %14 = vsyncpa [#allocation4], 0 }
   0x5   :  { %16 = vsyncpa [#allocation4 + $0x1], 0  ;;  %s804_s12 = smov 0   ;;  %s806_s13 = smov 0  }
   0x6   :  { %s808_s14 = smov 0   ;;  %s810_s15 = smov 0  }
   0x7 LB: > { %s825_s16 = sadd.s32 4294967295, %s773_s15   ;;  %s534_s17 = sadd.s32 4294967294, %s773_s15   ;;  %s773_s15 = sphi %s810_s15, %s1053_s15   ;;  %s769_s14 = sphi %s808_s14, %s1052_s14   ;;  %s765_s13 = sphi %s806_s13, %s1051_s13   ;;  %s761_s12 = sphi %s804_s12, %s1050_s12  }
   0x8   : > { %s829_s18 = sadd.s32 1, %s773_s15   ;;  %s29_s19 = sadd.s32 1, %s769_s14 }
   0x9   : > { %s26_s20 = ssub.s32 %s773_s15, %s829_s18  ;;  %p36_p0 = scmp.ne.s32.totalorder %s769_s14, %s765_s13 }
   0xa   : > { %p27_p1 = scmp.eq.s32.totalorder %s26_s20, 0  ;;  %p37_p2 = scmp.eq.s32.totalorder %s773_s15, 0 }
   0xb   : > { %p42_p3 = scmp.ne.s32.totalorder %s765_s13, %s761_s12  ;;  %p43_p4 = scmp.eq.s32.totalorder %s825_s16, 0 }
   0xc   : > { %s841_s21 = scalar_select %p27_p1, %s769_s14, %s29_s19  }
   0xd   : > { %p843_p5 = por %p37_p2, %p36_p0  ;;  %p847_p6 = por %p43_p4, %p42_p3 }
   0xe   : > { %p118_p7 = scmp.eq.s32.totalorder %s825_s16, 1  ;;  %p124_p8 = scmp.eq.s32.totalorder %s534_s17, 1 }
   0xf   : > { %s1039_s23 = scalar_select %p847_p6, 1, 0 }
  0x10   : > { %p599_p10 = scmp.lt.s32.totalorder %s773_s15, 2  ;;  %p854_p11 = por %p118_p7, %p36_p0 }
  0x11   : > { %p858_p12 = por %p124_p8, %p42_p3  ;;  %s863_s26 = sand.u32 1, %s769_s14  }
  0x12   : > { %s1040_s24 = scalar_select %p854_p11, 1, 0 }
  0x13   : > { %s1041_s25 = scalar_select %p858_p12, 1, 0 }
  0x14   : > { %s538_s27 = sshll.u32 %s773_s15, 7  ;;  %s537_s28 = sshll.u32 %s863_s26, 3 }
  0x15   : > { %s870_s4 = scalar_lea.hbm %s1032_s0, %s538_s27  ;;  %s148_s5 = scalar_lea.vmem [#allocation2], %s537_s28 }
  0x16   : > { %s155_s6 = sshll.u32 %s148_s5, 4  ;;  %p874_p13 = pnand %p599_p10, %p843_p5  ;;  %s878_s6 = int_to_ptr.vmem [resolvable:$true] %s155_s6 }
  0x17   : > { %s145_s8 = scalar_lea.sflag [#allocation3], %s863_s26  ;;  %s643_s9 = scalar_lea.hbm %s870_s4, 128 }
  0x18   : > { %p644_p2 = scmp.ne.s32.totalorder %s870_s4, %s643_s9  ;;  %p645_p3 = pneg %p874_p13 }
  0x19   : > { %s648_s17 = scalar_lea.hbm %s1032_s0, 256  ;;  %p649_p5 = scmp.lt.u32.totalorder %s870_s4, %s1032_s0 }
  0x1a   : > { %p646_p4 = pnand %p645_p3, %p644_p2  ;;  %p650_p8 = scmp.lt.u32.totalorder %s648_s17, %s643_s9 }
  0x1b   : > { %p652_p9 = scmp.lt.u32.totalorder %s643_s9, %s870_s4 }
  0x1c   : > { %p647_p7 = pneg %p646_p4  ;;  %p651_p10 = por %p650_p8, %p649_p5 }
  0x1e   : > { %p653_p0 = por %p652_p9, %p651_p10 }
  0x20   : > { %p654_p1 = pnand %p653_p0, %p647_p7 }
  0x22   : > { %657 = shalt.err (!%p654_p1)
}
  0x23   : > { %s658_s22 = scalar_lea.vmem %s878_s6, 128  ;;  %s775_s27 = smov [#allocation2]  }
  0x24   : > { %p659_p2 = scmp.ne.s32.totalorder %s878_s6, %s658_s22  ;;  %s663_s28 = sshll.u32 %s775_s27, 4  ;;  %s664_s28 = int_to_ptr.vmem [resolvable:$false] %s663_s28 }
  0x25   : > { %s665_s29 = scalar_lea.vmem %s664_s28, 256  ;;  %p666_p11 = scmp.lt.s32.totalorder %s878_s6, %s664_s28 }
  0x26   : > { %p661_p4 = pnand %p659_p2, %p645_p3  ;;  %p667_p5 = scmp.lt.s32.totalorder %s665_s29, %s658_s22 }
  0x28   : > { %p662_p12 = pneg %p661_p4  ;;  %p668_p8 = por %p667_p5, %p666_p11 }
  0x2a   : > { %p669_p9 = pnand %p668_p8, %p662_p12 }
  0x2c   : > { %672 = shalt.err (!%p669_p9)
}
  0x2d   : > { %591 = dma.hbm_to_vmem [thread:$0]  (!%p874_p13), %s870_s4, 128, %s878_s6, %s145_s8  }
  0x2e   : > { %p1043_p0 = scmp.lt.s32.totalorder %s773_s15, 3  ;;  %p1044_p1 = scmp.ge.s32.totalorder %s773_s15, 1 }
  0x2f   : > { %s539_s5 = sshll.u32 %s863_s26, 4  ;;  %s554_s9 = sshll.u32 %s773_s15, 8 }
  0x30   : > { %p912_p7 = pnand %p1044_p1, %p1043_p0  ;;  %s921_s17 = scalar_lea.hbm %s1033_s1, %s554_s9 }
  0x31   : > { %s166_s19 = scalar_lea.vmem [#allocation5], %s539_s5  ;;  %s163_s4 = scalar_lea.sflag [#allocation6], %s863_s26 }
  0x32   : > { %s173_s20 = sshll.u32 %s166_s19, 4  ;;  %s673_s6 = scalar_lea.hbm %s921_s17, 256  ;;  %s923_s20 = int_to_ptr.vmem [resolvable:$true] %s173_s20 }
  0x33   : > { %p674_p11 = scmp.ne.s32.totalorder %s921_s17, %s673_s6  ;;  %s678_s27 = scalar_lea.hbm %s1033_s1, 512 }
  0x34   : > { %p679_p2 = scmp.lt.u32.totalorder %s921_s17, %s1033_s1  ;;  %p680_p4 = scmp.lt.u32.totalorder %s678_s27, %s673_s6 }
  0x35   : > { %p676_p12 = pnand %p674_p11, %p645_p3  ;;  %p682_p8 = scmp.lt.u32.totalorder %s673_s6, %s921_s17 }
  0x36   : > { %p681_p5 = por %p680_p4, %p679_p2 }
  0x37   : > { %p677_p10 = pneg %p676_p12 }
  0x38   : > { %p683_p9 = por %p682_p8, %p681_p5 }
  0x3a   : > { %p684_p0 = pnand %p683_p9, %p677_p10 }
  0x3c   : > { %687 = shalt.err (!%p684_p0)
}
  0x3d   : > { %s688_s5 = scalar_lea.vmem %s923_s20, 256  ;;  %s776_s9 = smov [#allocation5]  }
  0x3e   : > { %p689_p1 = scmp.ne.s32.totalorder %s923_s20, %s688_s5  ;;  %s693_s10 = sshll.u32 %s776_s9, 4  ;;  %s694_s10 = int_to_ptr.vmem [resolvable:$false] %s693_s10 }
  0x3f   : > { %s695_s11 = scalar_lea.vmem %s694_s10, 512  ;;  %p696_p6 = scmp.lt.s32.totalorder %s923_s20, %s694_s10 }
  0x40   : > { %p691_p11 = pnand %p689_p1, %p645_p3  ;;  %p697_p2 = scmp.lt.s32.totalorder %s695_s11, %s688_s5 }
  0x42   : > { %p692_p12 = pneg %p691_p11  ;;  %p698_p4 = por %p697_p2, %p696_p6 }
  0x44   : > { %p699_p5 = pnand %p698_p4, %p692_p12 }
  0x46   : > { %702 = shalt.err (!%p699_p5)
}
  0x47   : > { %s777_s19 = smov 128   ;;  %s778_s6 = smov 8  }
  0x48   : > { %594 = dma.hbm_to_vmem [thread:$0]  (!%p874_p13), %s921_s17, 256, %s923_s20, %s163_s4, %s777_s19, %s777_s19, %s778_s6  }
  0x49   : > { %191 = sbr.rel (%p912_p7) target bundleno = 848 (0x350), region = 32  ;;  %s954_s8 = sand.u32 (!%p912_p7), 1, %s765_s13  }
  0x4a   : > { %s543_s22 = sshll.u32 (!%p912_p7), %s954_s8, 3  ;;  %s194_s27 = scalar_lea.sflag (!%p912_p7), [#allocation3], %s954_s8 }
  0x4b   : > { %s197_s28 = scalar_lea.vmem (!%p912_p7), [#allocation2], %s543_s22  ;;  %p1046_p6 = scmp.ne.s32.totalorder (!%p912_p7), %s1039_s23, 0 }
  0x50   : > { %748 = dma.done.wait (%p1046_p6), %s194_s27, 128  }
  0x51   : > { %750 = vsyncadd (%p1046_p6), %s194_s27, 4294967168  ;;  %s544_s26 = sshll.u32 %s954_s8, 4  ;;  %s203_s7 = scalar_lea.sflag [#allocation6], %s954_s8 }
  0x52   : > { %s206_s30 = scalar_lea.vmem [#allocation5], %s544_s26 }
  0x53   : > { %752 = dma.done.wait (%p1046_p6), %s203_s7, 256  }
  0x54   : > { %754 = vsyncadd (%p1046_p6), %s203_s7, 4294967040  ;;  %v779_v0 = vmov 0.0|0.0   ;;  %vm780_vm0 = vmmov 0   ;;  %v781_v1 = vmov 0.0   ;;  %vm244_vm1 = vcmask 261120   ;;  %v241_v2 = vld [vmem:[%s206_s30] sm:$0xff] }
  0x55   : > { %575 = vmatprep.subr.bf16.mxu0 %v779_v0  ;;  %565 = vmatprep.mubr.msk.f32.mxu0 %vm780_vm0, %v781_v1  ;;  %v242_v3 = vld [vmem:[%s206_s30 + $0x8] sm:$0xff]  ;;  %vm577_vm2 = vmpackc.low %vm244_vm1, %vm244_vm1  ;;  %p237_p13 = scmp.lt.s32.totalorder %s825_s16, 1  ;;  %v326_v6 = vlaneseq  ;;  %v782_v10 = vmov 0   ;;  %vm332_vm5 = vcmask 130048   ;;  %s551_s29 = sshll.u32 %s825_s16, 7 }
  0x56   : > { %579 = vmatprep.subr.bf16.mxu1 %v779_v0  ;;  %572 = vmatprep.mubr.msk.f32.mxu1 %vm780_vm0, %v781_v1  ;;  %v576_v4 = vpack.c.bf16 %v242_v3, %v241_v2  ;;  %v240_v5 = vld [vmem:[%s197_s28] sm:$0xff]  ;;  %s236_s5 = scalar_lea.vmem [#allocation7], %s543_s22  ;;  %s987_s19 = scalar_lea.hbm %s1035_s3, %s551_s29 }
  0x57   : > { %s238_s23 = scalar_select %p237_p13, %s825_s16, 1  ;;  %v327_v8 = vshrl.u32 %v326_v6, 7 }
  0x58   : > { %578 = vmatpush3.bf16.xpose.msk.msra.mxu0 %vm577_vm2, %v576_v4  ;;  %581 = vmatpush3.bf16.msra.mxu1 %v576_v4  ;;  %s432_s9 = sshll.u32 %s236_s5, 4  ;;  %s419_s6 = scalar_lea.sflag [#allocation4], %s954_s8  ;;  %s989_s9 = int_to_ptr.vmem [resolvable:$true] %s432_s9 }
  0x59   : > { %s239_s4 = scalar_lea.vmem %s1034_s2, %s238_s23  ;;  %v328_v9 = vsub.s32 0, %v327_v8  ;;  %s703_s27 = scalar_lea.vmem %s989_s9, 128 }
  0x5a   : > { %v243_v7 = vld [vmem:[%s239_s4] sm:$0x1]  ;;  %p704_p3 = scmp.ne.s32.totalorder %s989_s9, %s703_s27  ;;  %p1047_p7 = scmp.ne.s32.totalorder %s1040_s24, 0 }
  0x5b   : > { %vm324_vm3 = vcmp.eq.s32.totalorder %v243_v7, 0  ;;  %s783_s16 = smov [#allocation7]  }
  0x5c   : > { %v325_v11 = vsel %vm324_vm3, 1, %v782_v10  ;;  %p705_p10 = pnand %p704_p3, %p1047_p7  ;;  %s707_s22 = sshll.u32 %s783_s16, 4  ;;  %s708_s22 = int_to_ptr.vmem [resolvable:$false] %s707_s22 }
  0x5d   : > { %v329_v12 = vrot.slane %v325_v11, %v328_v9  ;;  %s709_s28 = scalar_lea.vmem %s708_s22, 256  ;;  %p710_p9 = scmp.lt.s32.totalorder %s989_s9, %s708_s22 }
  0x5e   : > { %p706_p8 = pneg %p705_p10  ;;  %p711_p0 = scmp.lt.s32.totalorder %s709_s28, %s703_s27 }
  0x5f   : > { %566 = vmatmul.mubr.msk.f32.vlgmr.msra.gmra.mrb[0].mxu0 %vm244_vm1, %v240_v5  ;;  %vm330_vm4 = vcmp.eq.s32.totalorder %v329_v12, 1 }
  0x60   : > { %p712_p1 = por %p711_p0, %p710_p9 }
  0x62   : > { %p713_p11 = pnand %p712_p1, %p706_p8 }
 0x132   : > { %v320_v13 = vpop.f32.mrb[0].mxu0 }
 0x133   : > { %v331_v14 = vsel %vm330_vm4, -1e+20, %v320_v13  ;;  %v567_v15 = vpop.f32.mrb[1].mxu0 }
 0x134   : > { %v333_v16 = vsel %vm332_vm5, %v331_v14, -inf }
 0x135   : > { %334 = vmax.xlane.f32.xlu0 %v333_v16 }
 0x1c2   : > { %v335_v17 = vpop.xlane.xlu0 %334 }
 0x1c3   : > { %v336_v18 = vsub.f32 %v331_v14, %v335_v17 }
 0x1c5   : > { %v337_v19 = vmul.f32 1.442695, %v336_v18 }
 0x1c7   : > { %639 = vpow2.f32 %v337_v19 }
 0x1d1   : > { %v640_v20 = vpop.eup %639 }
 0x1d2   : > { %v339_v21 = vsel %vm332_vm5, %v640_v20, 0.0 }
 0x1d3   : > { %340 = vadd.xlane.f32.xlu0 %v339_v21 }
 0x260   : > { %v341_v22 = vpop.xlane.xlu0 %340 }
 0x261   : > { %641 = vrcp.f32 %v341_v22 }
 0x26b   : > { %v642_v23 = vpop.eup %641 }
 0x26c   : > { %v343_v24 = vmul.f32 %v642_v23, %v640_v20 }
 0x26e   : > { %573 = vmatmul.mubr.msk.f32.vlgmr.msra.gmra.mrb[0].mxu1 %vm332_vm5, %v343_v24 }
 0x341   : > { %v413_v25 = vpop.f32.mrb[0].mxu1 }
 0x342   : > { %417 = vst.msk [vmem:[%s236_s5] sm:$0xff] %vm244_vm1, %v413_v25  ;;  %v574_v26 = vpop.f32.mrb[1].mxu1 }
 0x343   : > { %716 = shalt.err (!%p713_p11)
}
 0x344   : > { %s717_s8 = scalar_lea.hbm %s987_s19, 128  ;;  %s721_s30 = scalar_lea.hbm %s1035_s3, 256 }
 0x345   : > { %p718_p12 = scmp.ne.s32.totalorder %s987_s19, %s717_s8  ;;  %p722_p5 = scmp.lt.u32.totalorder %s987_s19, %s1035_s3 }
 0x346   : > { %p723_p6 = scmp.lt.u32.totalorder %s721_s30, %s717_s8  ;;  %p725_p3 = scmp.lt.u32.totalorder %s717_s8, %s987_s19 }
 0x347   : > { %p719_p2 = pnand %p718_p12, %p1047_p7 }
 0x348   : > { %p724_p13 = por %p723_p6, %p722_p5 }
 0x349   : > { %p720_p4 = pneg %p719_p2 }
 0x34a   : > { %p726_p10 = por %p725_p3, %p724_p13 }
 0x34c   : > { %p727_p8 = pnand %p726_p10, %p720_p4 }
 0x34e   : > { %730 = shalt.err (!%p727_p8)
}
 0x34f   : > { %586 = dma.vmem_to_hbm [thread:$0]  (%p1047_p7), %s989_s9, 128, %s987_s19, %s419_s6  }
 0x350 PF: > { %s444_s20 = sand.u32 1, %s761_s12   ;;  %p1048_p9 = scmp.ne.s32.totalorder %s1041_s25, 0 }
 0x351   : > { %p1049_p0 = scmp.ge.s32.totalorder %s773_s15, 2  ;;  %s445_s4 = scalar_lea.sflag [#allocation4], %s444_s20 }
 0x353   : > { %p596_p1 = pnand %p1049_p0, %p1048_p9 }
 0x355   : > { %756 = dma.done.wait (!%p596_p1), %s445_s4, 128  }
 0x356   : > { %758 = vsyncadd (!%p596_p1), %s445_s4, 4294967168  ;;  %p19_p11 = scmp.ge.s32.totalorder %s829_s18, 4   ;;  %s1050_s12 = smov %s765_s13 }
 0x357   : > { %s1051_s13 = smov %s769_s14  ;;  %s1052_s14 = smov %s841_s21 }
 0x358   : > { %s1053_s15 = smov %s829_s18  ;;  %21 = sbr.rel (!%p19_p11) target bundleno = 7 (0x7), region = 93 }
 0x35f   :  { %450 = vsyncpa [#allocation3], 1 }
 0x360   :  { %452 = vsyncpa [#allocation3 + $0x1], 1 }
 0x361   :  { %453 = vsyncpa [#allocation6], 1 }
 0x362   :  { %455 = vsyncpa [#allocation6 + $0x1], 1 }
 0x363   :  { %456 = vsyncpa [#allocation4], 1 }
 0x364   :  { %458 = vsyncpa [#allocation4 + $0x1], 1 }

</bundles_post_ra>
